<compile_context>
chip_gen: v5e
topology: v5e:2x2
jax: 0.10.0
libtpu: 0.0.40
codegen_flags: <defaults>
</compile_context>

<pallas_src>
import functools

import jax
import jax.numpy as jnp
from jax.experimental import pallas as pl
from jax.experimental.pallas import tpu as pltpu

LANE = 128  # lane width: pad output feature dims to a multiple of this


def _graphconv_kernel(a_ref, x_ref, w_ref, b_ref, o_ref):
    # Aggregate-first (associativity): (A_tile @ X) @ W + b, then ReLU.
    ax = jnp.dot(a_ref[...], x_ref[...], preferred_element_type=jnp.float32)
    h = jnp.dot(ax, w_ref[...], preferred_element_type=jnp.float32) + b_ref[...]
    o_ref[...] = jnp.maximum(h, 0.0).astype(o_ref.dtype)


def graphconv_layer(adj_bf16, x, w, b, *, tm=128, out_dtype=jnp.float32):
    """One GraphConv layer: relu(adj @ x @ w + b).

    adj_bf16: [N, N] bf16 normalized adjacency.
    x:        [N, C_in] layer input (cast to bf16 here).
    w:        [C_in, C_w] f32 weight (C_w expected lane-padded to 128).
    b:        [1, C_w] f32 bias.
    Returns [N, C_w] in out_dtype.
    """
    n = adj_bf16.shape[0]
    c_in = x.shape[1]
    c_w = w.shape[1]

    tm = min(tm, n)
    n_tiles = pl.cdiv(n, tm)
    n_pad = n_tiles * tm
    if n_pad != n:
        # Pad destination rows with zeros; padded rows produce zeros, sliced off.
        adj_bf16 = jnp.pad(adj_bf16, ((0, n_pad - n), (0, 0)))

    x_bf16 = x.astype(jnp.bfloat16)
    w = w.astype(jnp.float32)
    b = b.astype(jnp.float32)

    flops = 2 * n_pad * n * c_in + 2 * n_pad * c_in * c_w
    bytes_accessed = (
        adj_bf16.size * 2 + x_bf16.size * 2 + w.size * 4 + b.size * 4
        + n_pad * c_w * jnp.dtype(out_dtype).itemsize)

    out = pl.pallas_call(
        _graphconv_kernel,
        out_shape=jax.ShapeDtypeStruct((n_pad, c_w), out_dtype),
        grid=(n_tiles,),
        in_specs=[
            pl.BlockSpec((tm, n), lambda i: (i, 0)),      # A row tile (pipelined)
            pl.BlockSpec((n, c_in), lambda i: (0, 0)),    # layer input, resident
            pl.BlockSpec((c_in, c_w), lambda i: (0, 0)),  # weight, resident
            pl.BlockSpec((1, c_w), lambda i: (0, 0)),     # bias, resident
        ],
        out_specs=pl.BlockSpec((tm, c_w), lambda i: (i, 0)),
        compiler_params=pltpu.CompilerParams(
            dimension_semantics=("parallel",)),
        cost_estimate=pl.CostEstimate(
            flops=flops, transcendentals=0, bytes_accessed=bytes_accessed),
    )(adj_bf16, x_bf16, w, b)
    return out[:n]


def _pad_axis(a, axis, mult):
    pad = (-a.shape[axis]) % mult
    if pad == 0:
        return a
    widths = [(0, 0)] * a.ndim
    widths[axis] = (0, pad)
    return jnp.pad(a, widths)


@functools.partial(jax.jit, static_argnames=("tm",))
def node_classifier_forward(adj_norm, x, w1, b1, w2, b2, *, tm=128):
    """Full NodeClassifier forward: two GraphConv layers with ReLU."""
    n_classes = w2.shape[1]

    # Lane-dense padding of output feature dims (zero weight/bias columns give
    # zero activations after bias+ReLU, so padded lanes never affect results).
    w1p = _pad_axis(w1, 1, LANE)                      # [C_in, 128]
    b1p = _pad_axis(b1, 1, LANE)                      # [1,    128]
    w2p = _pad_axis(_pad_axis(w2, 0, LANE), 1, LANE)  # [128,  128] (rows match padded H1)
    b2p = _pad_axis(b2, 1, LANE)                      # [1,    128]

    adj_bf16 = adj_norm.astype(jnp.bfloat16)

    h1 = graphconv_layer(adj_bf16, x, w1p, b1p, tm=tm, out_dtype=jnp.bfloat16)
    h2 = graphconv_layer(adj_bf16, h1, w2p, b2p, tm=tm, out_dtype=jnp.float32)
    return h2[:, :n_classes]


def normalize_adjacency(adj):
    """DGL GraphConv norm='both': D_in^{-1/2} A D_out^{-1/2} (glue, plain JAX)."""
    d_out = jnp.maximum(adj.sum(axis=0), 1.0)   # out-degree of source nodes (cols)
    d_in = jnp.maximum(adj.sum(axis=1), 1.0)    # in-degree of destination nodes (rows)
    return adj * (d_in ** -0.5)[:, None] * (d_out ** -0.5)[None, :]


def init_params(key, hidden_channels, n_classes):
    """Glorot-uniform weights + zero biases (matches GraphConv defaults)."""
    c_in = hidden_channels
    c_h = hidden_channels // 2
    k1, k2 = jax.random.split(key)

    def glorot(k, fan_in, fan_out):
        limit = (6.0 / (fan_in + fan_out)) ** 0.5
        return jax.random.uniform(k, (fan_in, fan_out), jnp.float32, -limit, limit)

    w1 = glorot(k1, c_in, c_h)
    b1 = jnp.zeros((1, c_h), jnp.float32)
    w2 = glorot(k2, c_h, n_classes)
    b2 = jnp.zeros((1, n_classes), jnp.float32)
    return w1, b1, w2, b2


if __name__ == "__main__":
    key = jax.random.PRNGKey(0)
    k_adj, k_x, k_param = jax.random.split(key, 3)

    N = 256                 # number of graph nodes
    HIDDEN = 32             # hidden_channels
    N_CLASSES = 8
    TM = 128                # row-tile size (grid of 2 tiles)

    # Random directed graph (dense 0/1 adjacency), then DGL-style normalization.
    adj = (jax.random.uniform(k_adj, (N, N)) < 0.1).astype(jnp.float32)
    adj_norm = normalize_adjacency(adj)

    x = jax.random.normal(k_x, (N, HIDDEN), jnp.float32)
    w1, b1, w2, b2 = init_params(k_param, HIDDEN, N_CLASSES)

    out = node_classifier_forward(adj_norm, x, w1, b1, w2, b2, tm=TM)
    out = jax.block_until_ready(out)
    assert out.shape == (N, N_CLASSES)

    # Reference in plain JAX, mirroring the kernel's dtype pipeline
    # (bf16 adjacency / activations, f32 accumulate, aggregate-first order).
    hi = jax.lax.Precision.HIGHEST
    a_bf = adj_norm.astype(jnp.bfloat16)
    x_bf = x.astype(jnp.bfloat16)
    ax1 = jnp.dot(a_bf, x_bf, preferred_element_type=jnp.float32)
    h1_ref = jnp.maximum(jnp.dot(ax1, w1, precision=hi) + b1, 0.0).astype(jnp.bfloat16)
    ax2 = jnp.dot(a_bf, h1_ref, preferred_element_type=jnp.float32)
    ref = jnp.maximum(jnp.dot(ax2, w2, precision=hi) + b2, 0.0)

    assert jnp.allclose(out, ref, atol=5e-2, rtol=5e-2), (
        "mismatch vs reference: max abs err "
        f"{float(jnp.max(jnp.abs(out - ref)))}")

    print("KERNEL_OK")
</pallas_src>

<mosaic_0001>
module attributes {stable_mosaic.version = 11 : i64} {
  func.func @_graphconv_kernel(%arg0: i32, %arg1: memref<128x256xbf16, #tpu.memory_space<vmem>>, %arg2: memref<256x128xbf16, #tpu.memory_space<vmem>>, %arg3: memref<128x128xf32, #tpu.memory_space<vmem>>, %arg4: memref<1x128xf32, #tpu.memory_space<vmem>>, %arg5: memref<128x128xf32, #tpu.memory_space<vmem>>) attributes {dimension_semantics = [#tpu.dimension_semantics<parallel>], iteration_bounds = array<i64: 2>, scalar_prefetch = 0 : i64, scratch_operands = 0 : i64, tpu.core_type = #tpu.core_type<tc>, window_params = [{transform_indices = @transform_0, window_bounds = array<i64: 128, 256>}, {pipeline_mode = #tpu.pipeline_mode<synchronous>, transform_indices = @transform_1, window_bounds = array<i64: 256, 128>}, {pipeline_mode = #tpu.pipeline_mode<synchronous>, transform_indices = @transform_2, window_bounds = array<i64: 128, 128>}, {pipeline_mode = #tpu.pipeline_mode<synchronous>, transform_indices = @transform_3, window_bounds = array<i64: 1, 128>}, {transform_indices = @transform_4, window_bounds = array<i64: 128, 128>}]} {
    %c0 = arith.constant 0 : index
    %c0_0 = arith.constant 0 : index
    %0 = vector.load %arg1[%c0, %c0_0] : memref<128x256xbf16, #tpu.memory_space<vmem>>, vector<128x256xbf16>
    %c0_1 = arith.constant 0 : index
    %c0_2 = arith.constant 0 : index
    %1 = vector.load %arg2[%c0_1, %c0_2] : memref<256x128xbf16, #tpu.memory_space<vmem>>, vector<256x128xbf16>
    %cst = arith.constant dense<0.000000e+00> : vector<128x128xf32>
    %2 = tpu.matmul %0, %1, %cst {dimension_numbers = #tpu.dot_dimension_numbers<[1], [0], [0], [1], [0, 0, 1, 1], [], []>} : vector<128x256xbf16>, vector<256x128xbf16>, vector<128x128xf32> -> vector<128x128xf32>
    %c0_3 = arith.constant 0 : index
    %c0_4 = arith.constant 0 : index
    %3 = vector.load %arg3[%c0_3, %c0_4] : memref<128x128xf32, #tpu.memory_space<vmem>>, vector<128x128xf32>
    %cst_5 = arith.constant dense<0.000000e+00> : vector<128x128xf32>
    %4 = tpu.matmul %2, %3, %cst_5 {dimension_numbers = #tpu.dot_dimension_numbers<[1], [0], [0], [1], [0, 0, 1, 1], [], []>} : vector<128x128xf32>, vector<128x128xf32>, vector<128x128xf32> -> vector<128x128xf32>
    %c0_6 = arith.constant 0 : index
    %c0_7 = arith.constant 0 : index
    %5 = vector.load %arg4[%c0_6, %c0_7] : memref<1x128xf32, #tpu.memory_space<vmem>>, vector<1x128xf32>
    %6 = vector.broadcast %5 : vector<1x128xf32> to vector<128x128xf32>
    %7 = arith.addf %4, %6 : vector<128x128xf32>
    %cst_8 = arith.constant 0.000000e+00 : f32
    %8 = vector.broadcast %cst_8 : f32 to vector<128x128xf32>
    %9 = arith.maximumf %7, %8 : vector<128x128xf32>
    %c0_9 = arith.constant 0 : index
    %c0_10 = arith.constant 0 : index
    %10 = vector.load %arg5[%c0_9, %c0_10] : memref<128x128xf32, #tpu.memory_space<vmem>>, vector<128x128xf32>
    tpu.vector_store %arg5[%c0_9, %c0_10], %9 {strides = array<i32>} : memref<128x128xf32, #tpu.memory_space<vmem>>, vector<128x128xf32>,
    return
  }
  func.func @transform_0(%arg0: i32) -> (i32, i32) {
    %c0_i32 = arith.constant 0 : i32
    %c0_i32_0 = arith.constant 0 : i32
    return %arg0, %c0_i32 : i32, i32
  }
  func.func @transform_1(%arg0: i32) -> (i32, i32) {
    %c0_i32 = arith.constant 0 : i32
    %c0_i32_0 = arith.constant 0 : i32
    %c0_i32_1 = arith.constant 0 : i32
    return %c0_i32, %c0_i32_0 : i32, i32
  }
  func.func @transform_2(%arg0: i32) -> (i32, i32) {
    %c0_i32 = arith.constant 0 : i32
    %c0_i32_0 = arith.constant 0 : i32
    %c0_i32_1 = arith.constant 0 : i32
    return %c0_i32, %c0_i32_0 : i32, i32
  }
  func.func @transform_3(%arg0: i32) -> (i32, i32) {
    %c0_i32 = arith.constant 0 : i32
    %c0_i32_0 = arith.constant 0 : i32
    %c0_i32_1 = arith.constant 0 : i32
    return %c0_i32, %c0_i32_0 : i32, i32
  }
  func.func @transform_4(%arg0: i32) -> (i32, i32) {
    %c0_i32 = arith.constant 0 : i32
    %c0_i32_0 = arith.constant 0 : i32
    return %arg0, %c0_i32 : i32, i32
  }
}

module attributes {stable_mosaic.version = 11 : i64} {
  func.func @_graphconv_kernel(%arg0: i32, %arg1: memref<128x256xbf16, #tpu.memory_space<vmem>>, %arg2: memref<256x32xbf16, #tpu.memory_space<vmem>>, %arg3: memref<32x128xf32, #tpu.memory_space<vmem>>, %arg4: memref<1x128xf32, #tpu.memory_space<vmem>>, %arg5: memref<128x128xbf16, #tpu.memory_space<vmem>>) attributes {dimension_semantics = [#tpu.dimension_semantics<parallel>], iteration_bounds = array<i64: 2>, scalar_prefetch = 0 : i64, scratch_operands = 0 : i64, tpu.core_type = #tpu.core_type<tc>, window_params = [{transform_indices = @transform_0, window_bounds = array<i64: 128, 256>}, {pipeline_mode = #tpu.pipeline_mode<synchronous>, transform_indices = @transform_1, window_bounds = array<i64: 256, 32>}, {pipeline_mode = #tpu.pipeline_mode<synchronous>, transform_indices = @transform_2, window_bounds = array<i64: 32, 128>}, {pipeline_mode = #tpu.pipeline_mode<synchronous>, transform_indices = @transform_3, window_bounds = array<i64: 1, 128>}, {transform_indices = @transform_4, window_bounds = array<i64: 128, 128>}]} {
    %c0 = arith.constant 0 : index
    %c0_0 = arith.constant 0 : index
    %0 = vector.load %arg1[%c0, %c0_0] : memref<128x256xbf16, #tpu.memory_space<vmem>>, vector<128x256xbf16>
    %c0_1 = arith.constant 0 : index
    %c0_2 = arith.constant 0 : index
    %1 = vector.load %arg2[%c0_1, %c0_2] : memref<256x32xbf16, #tpu.memory_space<vmem>>, vector<256x32xbf16>
    %cst = arith.constant dense<0.000000e+00> : vector<128x32xf32>
    %2 = tpu.matmul %0, %1, %cst {dimension_numbers = #tpu.dot_dimension_numbers<[1], [0], [0], [1], [0, 0, 1, 1], [], []>} : vector<128x256xbf16>, vector<256x32xbf16>, vector<128x32xf32> -> vector<128x32xf32>
    %c0_3 = arith.constant 0 : index
    %c0_4 = arith.constant 0 : index
    %3 = vector.load %arg3[%c0_3, %c0_4] : memref<32x128xf32, #tpu.memory_space<vmem>>, vector<32x128xf32>
    %cst_5 = arith.constant dense<0.000000e+00> : vector<128x128xf32>
    %4 = tpu.matmul %2, %3, %cst_5 {dimension_numbers = #tpu.dot_dimension_numbers<[1], [0], [0], [1], [0, 0, 1, 1], [], []>} : vector<128x32xf32>, vector<32x128xf32>, vector<128x128xf32> -> vector<128x128xf32>
    %c0_6 = arith.constant 0 : index
    %c0_7 = arith.constant 0 : index
    %5 = vector.load %arg4[%c0_6, %c0_7] : memref<1x128xf32, #tpu.memory_space<vmem>>, vector<1x128xf32>
    %6 = vector.broadcast %5 : vector<1x128xf32> to vector<128x128xf32>
    %7 = arith.addf %4, %6 : vector<128x128xf32>
    %cst_8 = arith.constant 0.000000e+00 : f32
    %8 = vector.broadcast %cst_8 : f32 to vector<128x128xf32>
    %9 = arith.maximumf %7, %8 : vector<128x128xf32>
    %10 = arith.truncf %9 : vector<128x128xf32> to vector<128x128xbf16>
    %c0_9 = arith.constant 0 : index
    %c0_10 = arith.constant 0 : index
    %11 = vector.load %arg5[%c0_9, %c0_10] : memref<128x128xbf16, #tpu.memory_space<vmem>>, vector<128x128xbf16>
    tpu.vector_store %arg5[%c0_9, %c0_10], %10 {strides = array<i32>} : memref<128x128xbf16, #tpu.memory_space<vmem>>, vector<128x128xbf16>,
    return
  }
  func.func @transform_0(%arg0: i32) -> (i32, i32) {
    %c0_i32 = arith.constant 0 : i32
    %c0_i32_0 = arith.constant 0 : i32
    return %arg0, %c0_i32 : i32, i32
  }
  func.func @transform_1(%arg0: i32) -> (i32, i32) {
    %c0_i32 = arith.constant 0 : i32
    %c0_i32_0 = arith.constant 0 : i32
    %c0_i32_1 = arith.constant 0 : i32
    return %c0_i32, %c0_i32_0 : i32, i32
  }
  func.func @transform_2(%arg0: i32) -> (i32, i32) {
    %c0_i32 = arith.constant 0 : i32
    %c0_i32_0 = arith.constant 0 : i32
    %c0_i32_1 = arith.constant 0 : i32
    return %c0_i32, %c0_i32_0 : i32, i32
  }
  func.func @transform_3(%arg0: i32) -> (i32, i32) {
    %c0_i32 = arith.constant 0 : i32
    %c0_i32_0 = arith.constant 0 : i32
    %c0_i32_1 = arith.constant 0 : i32
    return %c0_i32, %c0_i32_0 : i32, i32
  }
  func.func @transform_4(%arg0: i32) -> (i32, i32) {
    %c0_i32 = arith.constant 0 : i32
    %c0_i32_0 = arith.constant 0 : i32
    return %arg0, %c0_i32 : i32, i32
  }
}

</mosaic_0001>

<bundles_post_ra>
// kernel: node_classifier_forward.3
= control target key start
LH: loop header
LB: loop body
LE: loop exit
PB: predicated region body
PF: predicated region fallthrough
CT: control target
= control target key end

     0   :  { %s946_s15 = smov 0   ;;  %s1139_s0 = inlined_call_operand.vmem [shape: bf16[256,256], index: 0, kind: input, shape index: {}]   ;;  %s1140_s1 = inlined_call_operand.vmem [shape: bf16[256,128], index: 1, kind: input, shape index: {}]   ;;  %s1141_s2 = inlined_call_operand.vmem [shape: f32[128,128], index: 2, kind: input, shape index: {}]   ;;  %s1142_s3 = inlined_call_operand.vmem [shape: f32[1,128], index: 3, kind: input, shape index: {}]   ;;  %s1143_s4 = inlined_call_operand.vmem [shape: f32[256,128], index: 4, kind: output, shape index: {}]  }
   0x1 LB: > { %s699_s16 = sadd.s32 4294967295, %s919_s15   ;;  %p703_p0 = scmp.ge.s32.totalorder %s919_s15, 1  ;;  %s919_s15 = sphi %s946_s15, %s14_s15  }
   0x2   : > { %p164_p1 = scmp.lt.s32.totalorder %s919_s15, 3 }
   0x4   : > { %p165_p2 = pnand %p703_p0, %p164_p1 }
   0x5   : > { %s704_s29 = sshll.u32 (!%p165_p2), %s699_s16, 4 }
   0x6   : > { %168 = sbr.rel (%p165_p2) target bundleno = 397 (0x18d), region = 36  ;;  %p192_p3 = scmp.lt.s32.totalorder (!%p165_p2), %s704_s29, 31 }
   0xb   : > { %v863_v0 = vld [vmem:[%s1140_s1 + $0x38] sm:$0xff]  ;;  %v862_v2 = vld [vmem:[%s1140_s1 + $0x30] sm:$0xff]  ;;  %v861_v4 = vld [vmem:[%s1140_s1 + $0x28] sm:$0xff]  ;;  %s1145_s29 = smov (!%p192_p3, %s704_s29), 31 }
   0xc   : > { %v871_v1 = vld [vmem:[%s1140_s1 + $0x78] sm:$0xff]  ;;  %428 = vmatpush.bf16.msra.mxu0 %v863_v0  ;;  %872 = vmatpush.bf16.msra.mxu3 %v863_v0  ;;  %v870_v3 = vld [vmem:[%s1140_s1 + $0x70] sm:$0xff]  ;;  %v869_v5 = vld [vmem:[%s1140_s1 + $0x68] sm:$0xff]  ;;  %s839_s17 = sshll.u32 %s1145_s29, 3 }
   0xd   : > { %477 = vmatpush.bf16.msra.mxu1 %v871_v1  ;;  %v860_v6 = vld [vmem:[%s1140_s1 + $0x20] sm:$0xff]  ;;  %v859_v8 = vld [vmem:[%s1140_s1 + $0x18] sm:$0xff]  ;;  %v858_v10 = vld [vmem:[%s1140_s1 + $0x10] sm:$0xff]  ;;  %s1001_s22 = scalar_lea.vmem %s1139_s0, %s839_s17  ;;  %s1103_s19 = scalar_lea.vmem %s1143_s4, %s839_s17 }
   0xe   : > { %v868_v7 = vld [vmem:[%s1140_s1 + $0x60] sm:$0xff]  ;;  %v867_v9 = vld [vmem:[%s1140_s1 + $0x58] sm:$0xff]  ;;  %v866_v11 = vld [vmem:[%s1140_s1 + $0x50] sm:$0xff] }
   0xf   : > { %v857_v12 = vld [vmem:[%s1140_s1 + $0x8] sm:$0xff]  ;;  %v856_v14 = vld [vmem:[%s1140_s1] sm:$0xff]  ;;  %v719_v25 = vld [vmem:[%s1001_s22 + $0x10] sm:$0xf] }
  0x10   : > { %429 = vmatpush.bf16.msra.mxu0 %v862_v2  ;;  %873 = vmatpush.bf16.msra.mxu3 %v862_v2  ;;  %v865_v13 = vld [vmem:[%s1140_s1 + $0x48] sm:$0xff]  ;;  %v711_v15 = vld [vmem:[%s1001_s22] sm:$0xf]  ;;  %v840_v20 = vld [vmem:[%s1001_s22 + $0x4] sm:$0xf] }
  0x11   : > { %478 = vmatpush.bf16.msra.mxu1 %v870_v3  ;;  %v841_v16 = vld [vmem:[%s1001_s22 + $0x4] sm:$0xf0]  ;;  %v759_v17 = vld [vmem:[%s1001_s22 + $0x60] sm:$0xf]  ;;  %v713_v21 = vld [vmem:[%s1001_s22 + $0x8] sm:$0xf0] }
  0x12   : > { %v853_v18 = vld [vmem:[%s1001_s22 + $0x64] sm:$0xf0]  ;;  %v864_v19 = vld [vmem:[%s1140_s1 + $0x40] sm:$0xff]  ;;  %v712_v22 = vor.u32 %v841_v16, %v711_v15  ;;  %v716_v24 = vor.u32 %v840_v20, %v713_v21  ;;  %v843_v26 = vld [vmem:[%s1001_s22 + $0x14] sm:$0xf0] }
  0x13   : > { %v760_v23 = vor.u32 %v853_v18, %v759_v17  ;;  %v767_v27 = vld [vmem:[%s1001_s22 + $0x70] sm:$0xf]  ;;  %v855_v28 = vld [vmem:[%s1001_s22 + $0x74] sm:$0xf0]  ;;  %v842_v29 = vld [vmem:[%s1001_s22 + $0x14] sm:$0xf]  ;;  %v720_v31 = vor.u32 %v843_v26, %v719_v25 }
  0x14   : > { %430 = vmatpush.bf16.msra.mxu0 %v861_v4  ;;  %874 = vmatpush.bf16.msra.mxu3 %v861_v4  ;;  %v721_v30 = vld [vmem:[%s1001_s22 + $0x18] sm:$0xf0]  ;;  %v768_v32 = vor.u32 %v855_v28, %v767_v27  ;;  %v727_v34 = vld [vmem:[%s1001_s22 + $0x20] sm:$0xf]  ;;  %v845_v35 = vld [vmem:[%s1001_s22 + $0x24] sm:$0xf0] }
  0x15   : > { %479 = vmatpush.bf16.msra.mxu1 %v869_v5  ;;  %v724_v33 = vor.u32 %v842_v29, %v721_v30  ;;  %v852_v36 = vld [vmem:[%s1001_s22 + $0x64] sm:$0xf]  ;;  %v761_v37 = vld [vmem:[%s1001_s22 + $0x68] sm:$0xf0]  ;;  %v728_v40 = vor.u32 %v845_v35, %v727_v34  ;;  %v735_v43 = vld [vmem:[%s1001_s22 + $0x30] sm:$0xf] }
  0x16   : > { %v844_v38 = vld [vmem:[%s1001_s22 + $0x24] sm:$0xf]  ;;  %v729_v39 = vld [vmem:[%s1001_s22 + $0x28] sm:$0xf0]  ;;  %v764_v41 = vor.u32 %v852_v36, %v761_v37  ;;  %v847_v44 = vld [vmem:[%s1001_s22 + $0x34] sm:$0xf0] }
  0x17   : > { %v732_v42 = vor.u32 %v844_v38, %v729_v39  ;;  %v854_v45 = vld [vmem:[%s1001_s22 + $0x74] sm:$0xf]  ;;  %v769_v46 = vld [vmem:[%s1001_s22 + $0x78] sm:$0xf0]  ;;  %v736_v49 = vor.u32 %v847_v44, %v735_v43  ;;  %v539_v54 = vld [vmem:[%s1141_s2 + $0x68] sm:$0xff] }
  0x18   : > { %431 = vmatpush.bf16.msra.mxu0 %v860_v6  ;;  %875 = vmatpush.bf16.msra.mxu3 %v860_v6  ;;  %v846_v47 = vld [vmem:[%s1001_s22 + $0x34] sm:$0xf]  ;;  %v737_v48 = vld [vmem:[%s1001_s22 + $0x38] sm:$0xf0]  ;;  %v772_v50 = vor.u32 %v854_v45, %v769_v46  ;;  %v538_v55 = vld [vmem:[%s1141_s2 + $0x60] sm:$0xff] }
  0x19   : > { %480 = vmatpush.bf16.msra.mxu1 %v868_v7  ;;  %v740_v51 = vor.u32 %v846_v47, %v737_v48  ;;  %v541_v52 = vld [vmem:[%s1141_s2 + $0x78] sm:$0xff]  ;;  %v540_v53 = vld [vmem:[%s1141_s2 + $0x70] sm:$0xff]  ;;  %v743_v57 = vld [vmem:[%s1001_s22 + $0x40] sm:$0xf] }
  0x1a   : > { %546 = vmatpush.msra.mxu2 %v541_v52  ;;  %v537_v56 = vld [vmem:[%s1141_s2 + $0x58] sm:$0xff]  ;;  %v849_v58 = vld [vmem:[%s1001_s22 + $0x44] sm:$0xf0]  ;;  %v536_v59 = vld [vmem:[%s1141_s2 + $0x50] sm:$0xff] }
  0x1b   : > { %v848_v60 = vld [vmem:[%s1001_s22 + $0x44] sm:$0xf]  ;;  %v745_v61 = vld [vmem:[%s1001_s22 + $0x48] sm:$0xf0]  ;;  %v744_v63 = vor.u32 %v849_v58, %v743_v57  ;;  %v533_v2 = vld [vmem:[%s1141_s2 + $0x38] sm:$0xff] }
  0x1c   : > { %432 = vmatpush.bf16.msra.mxu0 %v859_v8  ;;  %876 = vmatpush.bf16.msra.mxu3 %v859_v8  ;;  %v535_v62 = vld [vmem:[%s1141_s2 + $0x48] sm:$0xff]  ;;  %v748_v0 = vor.u32 %v848_v60, %v745_v61  ;;  %v529_v6 = vld [vmem:[%s1141_s2 + $0x18] sm:$0xff]  ;;  %v526_v15 = vld [vmem:[%s1141_s2] sm:$0xff] }
  0x1d   : > { %481 = vmatpush.bf16.msra.mxu1 %v867_v9  ;;  %547 = vmatpush.msra.mxu2 %v540_v53  ;;  %v531_v4 = vld [vmem:[%s1141_s2 + $0x28] sm:$0xff]  ;;  %v851_v8 = vld [vmem:[%s1001_s22 + $0x54] sm:$0xf0] }
  0x1f   : > { %548 = vmatpush.msra.mxu2 %v539_v54 }
  0x20   : > { %433 = vmatpush.bf16.msra.mxu0 %v858_v10  ;;  %877 = vmatpush.bf16.msra.mxu3 %v858_v10  ;;  %v850_v10 = vld [vmem:[%s1001_s22 + $0x54] sm:$0xf] }
  0x21   : > { %482 = vmatpush.bf16.msra.mxu1 %v866_v11  ;;  %549 = vmatpush.msra.mxu2 %v538_v55 }
  0x23   : > { %550 = vmatpush.msra.mxu2 %v537_v56 }
  0x24   : > { %434 = vmatpush.bf16.msra.mxu0 %v857_v12  ;;  %878 = vmatpush.bf16.msra.mxu3 %v857_v12 }
  0x25   : > { %483 = vmatpush.bf16.msra.mxu1 %v865_v13  ;;  %551 = vmatpush.msra.mxu2 %v536_v59 }
  0x27   : > { %552 = vmatpush.msra.mxu2 %v535_v62 }
  0x28   : > { %435 = vmatpush.bf16.msra.mxu0 %v856_v14  ;;  %879 = vmatpush.bf16.msra.mxu3 %v856_v14  ;;  %v527_v14 = vld [vmem:[%s1141_s2 + $0x8] sm:$0xff] }
  0x29   : > { %484 = vmatpush.bf16.msra.mxu1 %v864_v19 }
  0x2b   : > { %436 = vmatmul.bf16.vlgmr.msra.gmra.mxu0 %v712_v22  ;;  %466 = vmatmul.bf16.vlgmr.msra.gmra.mxu3 %v760_v23 }
  0x2c   : > { %880 = vmatpush.bf16.msrb.mxu3 %v871_v1  ;;  %485 = vmatmul.bf16.vlgmr.msra.gmra.mxu1 %v716_v24  ;;  %v534_v1 = vld [vmem:[%s1141_s2 + $0x40] sm:$0xff] }
  0x2d   : > { %553 = vmatpush.msra.mxu2 %v534_v1 }
  0x2f   : > { %554 = vmatpush.msra.mxu2 %v533_v2 }
  0x30   : > { %881 = vmatpush.bf16.msrb.mxu3 %v870_v3  ;;  %v532_v3 = vld [vmem:[%s1141_s2 + $0x30] sm:$0xff] }
  0x31   : > { %555 = vmatpush.msra.mxu2 %v532_v3 }
  0x33   : > { %556 = vmatpush.msra.mxu2 %v531_v4 }
  0x34   : > { %882 = vmatpush.bf16.msrb.mxu3 %v869_v5  ;;  %v530_v5 = vld [vmem:[%s1141_s2 + $0x20] sm:$0xff] }
  0x35   : > { %557 = vmatpush.msra.mxu2 %v530_v5 }
  0x37   : > { %558 = vmatpush.msra.mxu2 %v529_v6 }
  0x38   : > { %883 = vmatpush.bf16.msrb.mxu3 %v868_v7  ;;  %v751_v7 = vld [vmem:[%s1001_s22 + $0x50] sm:$0xf] }
  0x39   : > { %v752_v12 = vor.u32 %v851_v8, %v751_v7 }
  0x3b   : > { %441 = vmatmul.bf16.gmra.mxu0 %v720_v31  ;;  %471 = vmatmul.bf16.gmra.mxu3 %v768_v32 }
  0x3c   : > { %884 = vmatpush.bf16.msrb.mxu3 %v867_v9  ;;  %490 = vmatmul.bf16.gmra.mxu1 %v724_v33  ;;  %v528_v9 = vld [vmem:[%s1141_s2 + $0x10] sm:$0xff] }
  0x3d   : > { %559 = vmatpush.msra.mxu2 %v528_v9 }
  0x3f   : > { %560 = vmatpush.msra.mxu2 %v527_v14 }
  0x40   : > { %885 = vmatpush.bf16.msrb.mxu3 %v866_v11  ;;  %v753_v11 = vld [vmem:[%s1001_s22 + $0x58] sm:$0xf0] }
  0x41   : > { %561 = vmatpush.msra.mxu2 %v526_v15 }
  0x44   : > { %886 = vmatpush.bf16.msrb.mxu3 %v865_v13  ;;  %v756_v13 = vor.u32 %v850_v10, %v753_v11 }
  0x48   : > { %887 = vmatpush.bf16.msrb.mxu3 %v864_v19 }
  0x4b   : > { %446 = vmatmul.bf16.gmra.mxu0 %v728_v40  ;;  %515 = vmatmul.bf16.vlgmr.msrb.gmra.mxu3 %v764_v41 }
  0x4c   : > { %495 = vmatmul.bf16.gmra.mxu1 %v732_v42  ;;  %888 = vmatpush.msra.mxu3 %v541_v52 }
  0x4e   : > { %889 = vmatpush.msra.mxu3 %v540_v53 }
  0x50   : > { %890 = vmatpush.msra.mxu3 %v539_v54 }
  0x52   : > { %891 = vmatpush.msra.mxu3 %v538_v55 }
  0x54   : > { %892 = vmatpush.msra.mxu3 %v537_v56 }
  0x56   : > { %893 = vmatpush.msra.mxu3 %v536_v59 }
  0x58   : > { %894 = vmatpush.msra.mxu3 %v535_v62 }
  0x5a   : > { %895 = vmatpush.msra.mxu3 %v534_v1 }
  0x5b   : > { %451 = vmatmul.bf16.gmra.mxu0 %v736_v49  ;;  %520 = vmatmul.bf16.gmra.mxu3 %v772_v50 }
  0x5c   : > { %500 = vmatmul.bf16.gmra.mxu1 %v740_v51  ;;  %896 = vmatpush.msra.mxu3 %v533_v2 }
  0x5e   : > { %897 = vmatpush.msra.mxu3 %v532_v3 }
  0x60   : > { %898 = vmatpush.msra.mxu3 %v531_v4 }
  0x62   : > { %899 = vmatpush.msra.mxu3 %v530_v5 }
  0x64   : > { %900 = vmatpush.msra.mxu3 %v529_v6 }
  0x66   : > { %901 = vmatpush.msra.mxu3 %v528_v9 }
  0x68   : > { %902 = vmatpush.msra.mxu3 %v527_v14 }
  0x6a   : > { %903 = vmatpush.msra.mxu3 %v526_v15 }
  0x6b   : > { %456 = vmatmul.bf16.gmra.mxu0 %v744_v63 }
  0x6c   : > { %505 = vmatmul.bf16.gmra.mxu1 %v748_v0  ;;  %v1095_v0 = vld [vmem:[%s1142_s3] ss:$0 sm:$0xff] }
  0x7b   : > { %461 = vmatmul.bf16.gmra.mxu0 %v752_v12 }
  0x7c   : > { %510 = vmatmul.bf16.gmra.mxu1 %v756_v13 }
  0xa8   : > { %v437_v16 = vpop.f32.mrf.mxu0 }
  0xa9   : > { %v486_v17 = vpop.f32.mrf.mxu1 }
  0xaa   : > { %v487_v18 = vadd.f32 %v486_v17, %v437_v16 }
  0xac   : > { %562 = vmatmul.f32.vlgmr.msra.gmra.mxu2 %v487_v18 }
  0xae   : > { %v467_v19 = vpop.f32.mrf.mxu3 }
  0xb0   : > { %v439_v20 = vpop.f32.mrf.mxu0 }
  0xb1   : > { %v488_v21 = vpop.f32.mrf.mxu1 }
  0xb2   : > { %v489_v22 = vadd.f32 %v488_v21, %v439_v20 }
  0xb4   : > { %565 = vmatmul.f32.gmra.mxu2 %v489_v22 }
  0xb6   : > { %v469_v23 = vpop.f32.mrf.mxu3 }
  0xb8   : > { %v442_v24 = vpop.f32.mrf.mxu0 }
  0xb9   : > { %v491_v25 = vpop.f32.mrf.mxu1 }
  0xba   : > { %v492_v26 = vadd.f32 %v491_v25, %v442_v24 }
  0xbc   : > { %568 = vmatmul.f32.gmra.mxu2 %v492_v26 }
  0xbe   : > { %v472_v27 = vpop.f32.mrf.mxu3 }
  0xc0   : > { %v444_v28 = vpop.f32.mrf.mxu0 }
  0xc1   : > { %v493_v29 = vpop.f32.mrf.mxu1 }
  0xc2   : > { %v494_v30 = vadd.f32 %v493_v29, %v444_v28 }
  0xc4   : > { %571 = vmatmul.f32.gmra.mxu2 %v494_v30 }
  0xc6   : > { %v474_v31 = vpop.f32.mrf.mxu3 }
  0xc8   : > { %v447_v32 = vpop.f32.mrf.mxu0 }
  0xc9   : > { %v496_v33 = vpop.f32.mrf.mxu1 }
  0xca   : > { %v497_v34 = vadd.f32 %v496_v33, %v447_v32 }
  0xcc   : > { %574 = vmatmul.f32.gmra.mxu2 %v497_v34 }
  0xce   : > { %v516_v35 = vpop.f32.mrf.mxu3 }
  0xcf   : > { %v517_v36 = vadd.f32 %v516_v35, %v467_v19 }
  0xd0   : > { %v449_v37 = vpop.f32.mrf.mxu0 }
  0xd1   : > { %v498_v38 = vpop.f32.mrf.mxu1  ;;  %598 = vmatmul.f32.vlgmr.msra.gmra.mxu3 %v517_v36 }
  0xd2   : > { %v499_v39 = vadd.f32 %v498_v38, %v449_v37 }
  0xd4   : > { %577 = vmatmul.f32.gmra.mxu2 %v499_v39 }
  0xd6   : > { %v518_v40 = vpop.f32.mrf.mxu3 }
  0xd7   : > { %v519_v41 = vadd.f32 %v518_v40, %v469_v23 }
  0xd8   : > { %v452_v42 = vpop.f32.mrf.mxu0 }
  0xd9   : > { %v501_v43 = vpop.f32.mrf.mxu1  ;;  %601 = vmatmul.f32.gmra.mxu3 %v519_v41 }
  0xda   : > { %v502_v44 = vadd.f32 %v501_v43, %v452_v42 }
  0xdc   : > { %580 = vmatmul.f32.gmra.mxu2 %v502_v44 }
  0xde   : > { %v521_v45 = vpop.f32.mrf.mxu3 }
  0xdf   : > { %v522_v46 = vadd.f32 %v521_v45, %v472_v27 }
  0xe0   : > { %v454_v47 = vpop.f32.mrf.mxu0 }
  0xe1   : > { %v503_v48 = vpop.f32.mrf.mxu1  ;;  %604 = vmatmul.f32.gmra.mxu3 %v522_v46 }
  0xe2   : > { %v504_v49 = vadd.f32 %v503_v48, %v454_v47 }
  0xe4   : > { %583 = vmatmul.f32.gmra.mxu2 %v504_v49 }
  0xe6   : > { %v523_v50 = vpop.f32.mrf.mxu3 }
  0xe7   : > { %v524_v51 = vadd.f32 %v523_v50, %v474_v31 }
  0xe8   : > { %v457_v52 = vpop.f32.mrf.mxu0 }
  0xe9   : > { %v506_v53 = vpop.f32.mrf.mxu1  ;;  %607 = vmatmul.f32.gmra.mxu3 %v524_v51 }
  0xea   : > { %v507_v54 = vadd.f32 %v506_v53, %v457_v52 }
  0xec   : > { %586 = vmatmul.f32.gmra.mxu2 %v507_v54 }
  0xf0   : > { %v459_v55 = vpop.f32.mrf.mxu0 }
  0xf1   : > { %v508_v56 = vpop.f32.mrf.mxu1 }
  0xf2   : > { %v509_v57 = vadd.f32 %v508_v56, %v459_v55 }
  0xf4   : > { %589 = vmatmul.f32.gmra.mxu2 %v509_v57 }
  0xf8   : > { %v462_v58 = vpop.f32.mrf.mxu0 }
  0xf9   : > { %v511_v59 = vpop.f32.mrf.mxu1 }
  0xfa   : > { %v512_v60 = vadd.f32 %v511_v59, %v462_v58 }
  0xfc   : > { %592 = vmatmul.f32.gmra.mxu2 %v512_v60 }
 0x100   : > { %v464_v61 = vpop.f32.mrf.mxu0 }
 0x101   : > { %v513_v62 = vpop.f32.mrf.mxu1 }
 0x102   : > { %v514_v63 = vadd.f32 %v513_v62, %v464_v61 }
 0x104   : > { %595 = vmatmul.f32.gmra.mxu2 %v514_v63 }
 0x12f   : > { %v563_v1 = vpop.f32.mrf.mxu2 }
 0x130   : > { %v564_v2 = vadd.f32 %v1095_v0, %v563_v1 }
 0x132   : > { %v611_v3 = vmax.f32 %v564_v2, 0.0 }
 0x134   : > { %627 = vst [vmem:[%s1103_s19] sm:$0xff] %v611_v3 }
 0x137   : > { %v566_v4 = vpop.f32.mrf.mxu2 }
 0x138   : > { %v567_v5 = vadd.f32 %v1095_v0, %v566_v4 }
 0x13a   : > { %v612_v6 = vmax.f32 %v567_v5, 0.0 }
 0x13c   : > { %628 = vst [vmem:[%s1103_s19 + $0x8] sm:$0xff] %v612_v6 }
 0x13f   : > { %v569_v7 = vpop.f32.mrf.mxu2 }
 0x140   : > { %v570_v8 = vadd.f32 %v1095_v0, %v569_v7 }
 0x142   : > { %v613_v9 = vmax.f32 %v570_v8, 0.0 }
 0x144   : > { %629 = vst [vmem:[%s1103_s19 + $0x10] sm:$0xff] %v613_v9 }
 0x147   : > { %v572_v10 = vpop.f32.mrf.mxu2 }
 0x148   : > { %v573_v11 = vadd.f32 %v1095_v0, %v572_v10 }
 0x14a   : > { %v614_v12 = vmax.f32 %v573_v11, 0.0 }
 0x14c   : > { %630 = vst [vmem:[%s1103_s19 + $0x18] sm:$0xff] %v614_v12 }
 0x14f   : > { %v575_v13 = vpop.f32.mrf.mxu2 }
 0x150   : > { %v576_v14 = vadd.f32 %v1095_v0, %v575_v13 }
 0x152   : > { %v615_v15 = vmax.f32 %v576_v14, 0.0 }
 0x154   : > { %631 = vst [vmem:[%s1103_s19 + $0x20] sm:$0xff] %v615_v15  ;;  %v599_v16 = vpop.f32.mrf.mxu3 }
 0x155   : > { %v600_v17 = vadd.f32 %v1095_v0, %v599_v16 }
 0x157   : > { %v623_v18 = vmax.f32 %v600_v17, 0.0  ;;  %v578_v19 = vpop.f32.mrf.mxu2 }
 0x158   : > { %v579_v20 = vadd.f32 %v1095_v0, %v578_v19 }
 0x159   : > { %639 = vst [vmem:[%s1103_s19 + $0x60] sm:$0xff] %v623_v18 }
 0x15a   : > { %v616_v21 = vmax.f32 %v579_v20, 0.0 }
 0x15c   : > { %632 = vst [vmem:[%s1103_s19 + $0x28] sm:$0xff] %v616_v21  ;;  %v602_v22 = vpop.f32.mrf.mxu3 }
 0x15d   : > { %v603_v23 = vadd.f32 %v1095_v0, %v602_v22 }
 0x15f   : > { %v624_v24 = vmax.f32 %v603_v23, 0.0  ;;  %v581_v25 = vpop.f32.mrf.mxu2 }
 0x160   : > { %v582_v26 = vadd.f32 %v1095_v0, %v581_v25 }
 0x161   : > { %640 = vst [vmem:[%s1103_s19 + $0x68] sm:$0xff] %v624_v24 }
 0x162   : > { %v617_v27 = vmax.f32 %v582_v26, 0.0 }
 0x164   : > { %633 = vst [vmem:[%s1103_s19 + $0x30] sm:$0xff] %v617_v27  ;;  %v605_v28 = vpop.f32.mrf.mxu3 }
 0x165   : > { %v606_v29 = vadd.f32 %v1095_v0, %v605_v28 }
 0x167   : > { %v625_v30 = vmax.f32 %v606_v29, 0.0  ;;  %v584_v31 = vpop.f32.mrf.mxu2 }
 0x168   : > { %v585_v32 = vadd.f32 %v1095_v0, %v584_v31 }
 0x169   : > { %641 = vst [vmem:[%s1103_s19 + $0x70] sm:$0xff] %v625_v30 }
 0x16a   : > { %v618_v33 = vmax.f32 %v585_v32, 0.0 }
 0x16c   : > { %634 = vst [vmem:[%s1103_s19 + $0x38] sm:$0xff] %v618_v33  ;;  %v608_v34 = vpop.f32.mrf.mxu3 }
 0x16d   : > { %v609_v35 = vadd.f32 %v1095_v0, %v608_v34 }
 0x16f   : > { %v626_v36 = vmax.f32 %v609_v35, 0.0  ;;  %v587_v37 = vpop.f32.mrf.mxu2 }
 0x170   : > { %v588_v38 = vadd.f32 %v1095_v0, %v587_v37 }
 0x171   : > { %642 = vst [vmem:[%s1103_s19 + $0x78] sm:$0xff] %v626_v36 }
 0x172   : > { %v619_v39 = vmax.f32 %v588_v38, 0.0 }
 0x174   : > { %635 = vst [vmem:[%s1103_s19 + $0x40] sm:$0xff] %v619_v39 }
 0x177   : > { %v590_v40 = vpop.f32.mrf.mxu2 }
 0x178   : > { %v591_v41 = vadd.f32 %v1095_v0, %v590_v40 }
 0x17a   : > { %v620_v42 = vmax.f32 %v591_v41, 0.0 }
 0x17c   : > { %636 = vst [vmem:[%s1103_s19 + $0x48] sm:$0xff] %v620_v42 }
 0x17f   : > { %v593_v43 = vpop.f32.mrf.mxu2 }
 0x180   : > { %v594_v44 = vadd.f32 %v1095_v0, %v593_v43 }
 0x182   : > { %v621_v45 = vmax.f32 %v594_v44, 0.0 }
 0x184   : > { %637 = vst [vmem:[%s1103_s19 + $0x50] sm:$0xff] %v621_v45 }
 0x187   : > { %v596_v46 = vpop.f32.mrf.mxu2 }
 0x188   : > { %v597_v47 = vadd.f32 %v1095_v0, %v596_v46 }
 0x18a   : > { %v622_v48 = vmax.f32 %v597_v47, 0.0 }
 0x18c   : > { %638 = vst [vmem:[%s1103_s19 + $0x58] sm:$0xff] %v622_v48 }
 0x18d PF: > { %s14_s15 = sadd.s32 1, %s919_s15  }
 0x18e   : > { %p11_p4 = scmp.ge.s32.totalorder %s14_s15, 4  }
 0x190   :  { %13 = sbr.rel (!%p11_p4) target bundleno = 1 (0x1), region = 66 }

// kernel: node_classifier_forward.2
= control target key start
LH: loop header
LB: loop body
LE: loop exit
PB: predicated region body
PF: predicated region fallthrough
CT: control target
= control target key end

     0   :  { %s1050_s15 = smov 0   ;;  %s1194_s0 = inlined_call_operand.vmem [shape: bf16[256,256], index: 0, kind: input, shape index: {}]   ;;  %s1195_s1 = inlined_call_operand.vmem [shape: bf16[256,32], index: 1, kind: input, shape index: {}]   ;;  %s1196_s2 = inlined_call_operand.vmem [shape: f32[32,128], index: 2, kind: input, shape index: {}]   ;;  %s1197_s3 = inlined_call_operand.vmem [shape: f32[1,128], index: 3, kind: input, shape index: {}]   ;;  %s1198_s4 = inlined_call_operand.vmem [shape: bf16[256,128], index: 4, kind: output, shape index: {}]  }
   0x1 LB: > { %s752_s16 = sadd.s32 4294967295, %s1023_s15   ;;  %p756_p0 = scmp.ge.s32.totalorder %s1023_s15, 1  ;;  %s1023_s15 = sphi %s1050_s15, %s14_s15  }
   0x2   : > { %p164_p1 = scmp.lt.s32.totalorder %s1023_s15, 3 }
   0x4   : > { %p165_p2 = pnand %p756_p0, %p164_p1 }
   0x5   : > { %s757_s29 = sshll.u32 (!%p165_p2), %s752_s16, 4 }
   0x6   : > { %168 = sbr.rel (%p165_p2) target bundleno = 423 (0x1a7), region = 36  ;;  %p192_p3 = scmp.lt.s32.totalorder (!%p165_p2), %s757_s29, 31 }
   0xb   : > { %v932_v0 = vld [vmem:[%s1195_s1 + $0x38] sm:$0xff]  ;;  %v931_v2 = vld [vmem:[%s1195_s1 + $0x30] sm:$0xff]  ;;  %v930_v4 = vld [vmem:[%s1195_s1 + $0x28] sm:$0xff]  ;;  %s1200_s29 = smov (!%p192_p3, %s757_s29), 31  ;;  %vm534_vm0 = vcmask 261120  }
   0xc   : > { %v940_v1 = vld [vmem:[%s1195_s1 + $0x78] sm:$0xff]  ;;  %428 = vmatpush.bf16.msra.mxu0 %v932_v0  ;;  %v939_v3 = vld [vmem:[%s1195_s1 + $0x70] sm:$0xff]  ;;  %988 = vmatpush.bf16.msra.mxu3 %v932_v0  ;;  %v938_v5 = vld [vmem:[%s1195_s1 + $0x68] sm:$0xff]  ;;  %s908_s17 = sshll.u32 %s1200_s29, 3  ;;  %s761_s14 = sshll.u32 %s1200_s29, 2 }
   0xd   : > { %477 = vmatpush.bf16.msra.mxu1 %v940_v1  ;;  %v929_v6 = vld [vmem:[%s1195_s1 + $0x20] sm:$0xff]  ;;  %v928_v8 = vld [vmem:[%s1195_s1 + $0x18] sm:$0xff]  ;;  %v927_v10 = vld [vmem:[%s1195_s1 + $0x10] sm:$0xff]  ;;  %s1106_s24 = scalar_lea.vmem %s1194_s0, %s908_s17  ;;  %s1181_s18 = scalar_lea.vmem %s1198_s4, %s761_s14 }
   0xe   : > { %v937_v7 = vld [vmem:[%s1195_s1 + $0x60] sm:$0xff]  ;;  %v936_v9 = vld [vmem:[%s1195_s1 + $0x58] sm:$0xff]  ;;  %v935_v11 = vld [vmem:[%s1195_s1 + $0x50] sm:$0xff] }
   0xf   : > { %v926_v12 = vld [vmem:[%s1195_s1 + $0x8] sm:$0xff]  ;;  %v925_v14 = vld [vmem:[%s1195_s1] sm:$0xff]  ;;  %v772_v25 = vld [vmem:[%s1106_s24 + $0x10] sm:$0xf] }
  0x10   : > { %429 = vmatpush.bf16.msra.mxu0 %v931_v2  ;;  %989 = vmatpush.bf16.msra.mxu3 %v931_v2  ;;  %v934_v13 = vld [vmem:[%s1195_s1 + $0x48] sm:$0xff]  ;;  %v933_v15 = vld [vmem:[%s1195_s1 + $0x40] sm:$0xff]  ;;  %v912_v26 = vld [vmem:[%s1106_s24 + $0x14] sm:$0xf0] }
  0x11   : > { %478 = vmatpush.bf16.msra.mxu1 %v939_v3  ;;  %v764_v16 = vld [vmem:[%s1106_s24] sm:$0xf]  ;;  %v910_v17 = vld [vmem:[%s1106_s24 + $0x4] sm:$0xf0]  ;;  %v909_v18 = vld [vmem:[%s1106_s24 + $0x4] sm:$0xf]  ;;  %v773_v31 = vor.u32 %v912_v26, %v772_v25 }
  0x12   : > { %v766_v19 = vld [vmem:[%s1106_s24 + $0x8] sm:$0xf0]  ;;  %v812_v20 = vld [vmem:[%s1106_s24 + $0x60] sm:$0xf]  ;;  %v922_v21 = vld [vmem:[%s1106_s24 + $0x64] sm:$0xf0]  ;;  %v765_v22 = vor.u32 %v910_v17, %v764_v16 }
  0x13   : > { %v769_v23 = vor.u32 %v909_v18, %v766_v19  ;;  %v813_v24 = vor.u32 %v922_v21, %v812_v20  ;;  %v911_v27 = vld [vmem:[%s1106_s24 + $0x14] sm:$0xf]  ;;  %v774_v28 = vld [vmem:[%s1106_s24 + $0x18] sm:$0xf0]  ;;  %v820_v29 = vld [vmem:[%s1106_s24 + $0x70] sm:$0xf] }
  0x14   : > { %430 = vmatpush.bf16.msra.mxu0 %v930_v4  ;;  %990 = vmatpush.bf16.msra.mxu3 %v930_v4  ;;  %v924_v30 = vld [vmem:[%s1106_s24 + $0x74] sm:$0xf0]  ;;  %v777_v32 = vor.u32 %v911_v27, %v774_v28  ;;  %v780_v34 = vld [vmem:[%s1106_s24 + $0x20] sm:$0xf]  ;;  %v914_v35 = vld [vmem:[%s1106_s24 + $0x24] sm:$0xf0] }
  0x15   : > { %479 = vmatpush.bf16.msra.mxu1 %v938_v5  ;;  %v821_v33 = vor.u32 %v924_v30, %v820_v29  ;;  %v913_v36 = vld [vmem:[%s1106_s24 + $0x24] sm:$0xf]  ;;  %v782_v37 = vld [vmem:[%s1106_s24 + $0x28] sm:$0xf0]  ;;  %v781_v40 = vor.u32 %v914_v35, %v780_v34  ;;  %v788_v43 = vld [vmem:[%s1106_s24 + $0x30] sm:$0xf] }
  0x16   : > { %v921_v38 = vld [vmem:[%s1106_s24 + $0x64] sm:$0xf]  ;;  %v814_v39 = vld [vmem:[%s1106_s24 + $0x68] sm:$0xf0]  ;;  %v785_v41 = vor.u32 %v913_v36, %v782_v37  ;;  %v916_v44 = vld [vmem:[%s1106_s24 + $0x34] sm:$0xf0] }
  0x17   : > { %v817_v42 = vor.u32 %v921_v38, %v814_v39  ;;  %v915_v45 = vld [vmem:[%s1106_s24 + $0x34] sm:$0xf]  ;;  %v790_v46 = vld [vmem:[%s1106_s24 + $0x38] sm:$0xf0]  ;;  %v789_v49 = vor.u32 %v916_v44, %v788_v43  ;;  %v796_v54 = vld [vmem:[%s1106_s24 + $0x40] sm:$0xf] }
  0x18   : > { %431 = vmatpush.bf16.msra.mxu0 %v929_v6  ;;  %991 = vmatpush.bf16.msra.mxu3 %v929_v6  ;;  %v923_v47 = vld [vmem:[%s1106_s24 + $0x74] sm:$0xf]  ;;  %v822_v48 = vld [vmem:[%s1106_s24 + $0x78] sm:$0xf0]  ;;  %v793_v50 = vor.u32 %v915_v45, %v790_v46  ;;  %v918_v55 = vld [vmem:[%s1106_s24 + $0x44] sm:$0xf0] }
  0x19   : > { %480 = vmatpush.bf16.msra.mxu1 %v937_v7  ;;  %v825_v51 = vor.u32 %v923_v47, %v822_v48  ;;  %v529_v52 = vld [vmem:[%s1196_s2 + $0x18] sm:$0xff]  ;;  %v528_v53 = vld [vmem:[%s1196_s2 + $0x10] sm:$0xff]  ;;  %v917_v56 = vld [vmem:[%s1106_s24 + $0x44] sm:$0xf]  ;;  %v797_v58 = vor.u32 %v918_v55, %v796_v54 }
  0x1a   : > { %595 = vmatpush.msra.mxu2 %v529_v52  ;;  %v798_v57 = vld [vmem:[%s1106_s24 + $0x48] sm:$0xf0]  ;;  %v804_v60 = vld [vmem:[%s1106_s24 + $0x50] sm:$0xf]  ;;  %v920_v61 = vld [vmem:[%s1106_s24 + $0x54] sm:$0xf0] }
  0x1b   : > { %v801_v59 = vor.u32 %v917_v56, %v798_v57  ;;  %v919_v62 = vld [vmem:[%s1106_s24 + $0x54] sm:$0xf]  ;;  %v806_v63 = vld [vmem:[%s1106_s24 + $0x58] sm:$0xf0]  ;;  %v805_v0 = vor.u32 %v920_v61, %v804_v60  ;;  %v527_v2 = vld [vmem:[%s1196_s2 + $0x8] sm:$0xff] }
  0x1c   : > { %432 = vmatpush.bf16.msra.mxu0 %v928_v8  ;;  %992 = vmatpush.bf16.msra.mxu3 %v928_v8 }
  0x1d   : > { %481 = vmatpush.bf16.msra.mxu1 %v936_v9  ;;  %596 = vmatpush.msra.mxu2 %v528_v53 }
  0x1f   : > { %597 = vmatpush.msra.mxu2 %v527_v2 }
  0x20   : > { %433 = vmatpush.bf16.msra.mxu0 %v927_v10  ;;  %993 = vmatpush.bf16.msra.mxu3 %v927_v10 }
  0x21   : > { %482 = vmatpush.bf16.msra.mxu1 %v935_v11 }
  0x24   : > { %434 = vmatpush.bf16.msra.mxu0 %v926_v12  ;;  %994 = vmatpush.bf16.msra.mxu3 %v926_v12 }
  0x25   : > { %483 = vmatpush.bf16.msra.mxu1 %v934_v13 }
  0x28   : > { %435 = vmatpush.bf16.msra.mxu0 %v925_v14  ;;  %995 = vmatpush.bf16.msra.mxu3 %v925_v14 }
  0x29   : > { %484 = vmatpush.bf16.msra.mxu1 %v933_v15 }
  0x2b   : > { %436 = vmatmul.bf16.vlgmr.msra.gmra.mxu0 %v765_v22  ;;  %466 = vmatmul.bf16.vlgmr.msra.gmra.mxu3 %v813_v24 }
  0x2c   : > { %996 = vmatpush.bf16.msrb.mxu3 %v940_v1  ;;  %485 = vmatmul.bf16.vlgmr.msra.gmra.mxu1 %v769_v23  ;;  %v809_v1 = vor.u32 %v919_v62, %v806_v63 }
  0x30   : > { %997 = vmatpush.bf16.msrb.mxu3 %v939_v3  ;;  %v526_v3 = vld [vmem:[%s1196_s2] sm:$0xff] }
  0x31   : > { %598 = vmatpush.msra.mxu2 %v526_v3 }
  0x34   : > { %998 = vmatpush.bf16.msrb.mxu3 %v938_v5 }
  0x38   : > { %999 = vmatpush.bf16.msrb.mxu3 %v937_v7 }
  0x3b   : > { %441 = vmatmul.bf16.gmra.mxu0 %v773_v31  ;;  %471 = vmatmul.bf16.gmra.mxu3 %v821_v33 }
  0x3c   : > { %1000 = vmatpush.bf16.msrb.mxu3 %v936_v9  ;;  %490 = vmatmul.bf16.gmra.mxu1 %v777_v32 }
  0x40   : > { %1001 = vmatpush.bf16.msrb.mxu3 %v935_v11 }
  0x44   : > { %1002 = vmatpush.bf16.msrb.mxu3 %v934_v13 }
  0x48   : > { %1003 = vmatpush.bf16.msrb.mxu3 %v933_v15 }
  0x4b   : > { %446 = vmatmul.bf16.gmra.mxu0 %v781_v40  ;;  %515 = vmatmul.bf16.vlgmr.msrb.gmra.mxu3 %v817_v42 }
  0x4c   : > { %495 = vmatmul.bf16.gmra.mxu1 %v785_v41  ;;  %1004 = vmatpush.msra.mxu3 %v529_v52 }
  0x4e   : > { %1005 = vmatpush.msra.mxu3 %v528_v53  ;;  %v1016_v53 = vld [vmem:[%s1197_s3] ss:$0 sm:$0xff] }
  0x50   : > { %1006 = vmatpush.msra.mxu3 %v527_v2 }
  0x52   : > { %1007 = vmatpush.msra.mxu3 %v526_v3 }
  0x5b   : > { %451 = vmatmul.bf16.gmra.mxu0 %v789_v49  ;;  %520 = vmatmul.bf16.gmra.mxu3 %v825_v51 }
  0x5c   : > { %500 = vmatmul.bf16.gmra.mxu1 %v793_v50 }
  0x6b   : > { %456 = vmatmul.bf16.gmra.mxu0 %v797_v58 }
  0x6c   : > { %505 = vmatmul.bf16.gmra.mxu1 %v801_v59 }
  0x7b   : > { %461 = vmatmul.bf16.gmra.mxu0 %v805_v0 }
  0x7c   : > { %510 = vmatmul.bf16.gmra.mxu1 %v809_v1 }
  0xa8   : > { %v437_v4 = vpop.f32.mrf.mxu0 }
  0xa9   : > { %v486_v5 = vpop.f32.mrf.mxu1 }
  0xaa   : > { %v487_v6 = vadd.f32 %v486_v5, %v437_v4 }
  0xac   : > { %890 = vmatmul.msk.f32.vlgmr.msra.gmra.mxu2 %vm534_vm0, %v487_v6 }
  0xae   : > { %v467_v7 = vpop.f32.mrf.mxu3 }
  0xb0   : > { %v439_v8 = vpop.f32.mrf.mxu0 }
  0xb1   : > { %v488_v9 = vpop.f32.mrf.mxu1 }
  0xb2   : > { %v489_v10 = vadd.f32 %v488_v9, %v439_v8 }
  0xb4   : > { %891 = vmatmul.msk.f32.gmra.mxu2 %vm534_vm0, %v489_v10 }
  0xb6   : > { %v469_v11 = vpop.f32.mrf.mxu3 }
  0xb8   : > { %v442_v12 = vpop.f32.mrf.mxu0 }
  0xb9   : > { %v491_v13 = vpop.f32.mrf.mxu1 }
  0xba   : > { %v492_v14 = vadd.f32 %v491_v13, %v442_v12 }
  0xbc   : > { %892 = vmatmul.msk.f32.gmra.mxu2 %vm534_vm0, %v492_v14 }
  0xbe   : > { %v472_v15 = vpop.f32.mrf.mxu3 }
  0xc0   : > { %v444_v16 = vpop.f32.mrf.mxu0 }
  0xc1   : > { %v493_v17 = vpop.f32.mrf.mxu1 }
  0xc2   : > { %v494_v18 = vadd.f32 %v493_v17, %v444_v16 }
  0xc4   : > { %893 = vmatmul.msk.f32.gmra.mxu2 %vm534_vm0, %v494_v18 }
  0xc6   : > { %v474_v19 = vpop.f32.mrf.mxu3 }
  0xc8   : > { %v447_v20 = vpop.f32.mrf.mxu0 }
  0xc9   : > { %v496_v21 = vpop.f32.mrf.mxu1 }
  0xca   : > { %v497_v22 = vadd.f32 %v496_v21, %v447_v20 }
  0xcc   : > { %894 = vmatmul.msk.f32.gmra.mxu2 %vm534_vm0, %v497_v22 }
  0xce   : > { %v516_v23 = vpop.f32.mrf.mxu3 }
  0xcf   : > { %v517_v49 = vadd.f32 %v516_v23, %v467_v7 }
  0xd0   : > { %v449_v24 = vpop.f32.mrf.mxu0 }
  0xd1   : > { %v498_v25 = vpop.f32.mrf.mxu1 }
  0xd2   : > { %v499_v26 = vadd.f32 %v498_v25, %v449_v24 }
  0xd4   : > { %895 = vmatmul.msk.f32.gmra.mxu2 %vm534_vm0, %v499_v26 }
  0xd6   : > { %v518_v27 = vpop.f32.mrf.mxu3 }
  0xd7   : > { %v519_v50 = vadd.f32 %v518_v27, %v469_v11 }
  0xd8   : > { %v452_v28 = vpop.f32.mrf.mxu0 }
  0xd9   : > { %v501_v29 = vpop.f32.mrf.mxu1 }
  0xda   : > { %v502_v30 = vadd.f32 %v501_v29, %v452_v28 }
  0xdc   : > { %896 = vmatmul.msk.f32.gmra.mxu2 %vm534_vm0, %v502_v30 }
  0xde   : > { %v521_v31 = vpop.f32.mrf.mxu3 }
  0xdf   : > { %v522_v51 = vadd.f32 %v521_v31, %v472_v15 }
  0xe0   : > { %v454_v32 = vpop.f32.mrf.mxu0 }
  0xe1   : > { %v503_v33 = vpop.f32.mrf.mxu1 }
  0xe2   : > { %v504_v34 = vadd.f32 %v503_v33, %v454_v32 }
  0xe4   : > { %897 = vmatmul.msk.f32.gmra.mxu2 %vm534_vm0, %v504_v34 }
  0xe6   : > { %v523_v35 = vpop.f32.mrf.mxu3 }
  0xe7   : > { %v524_v38 = vadd.f32 %v523_v35, %v474_v19 }
  0xe8   : > { %v457_v36 = vpop.f32.mrf.mxu0 }
  0xe9   : > { %v506_v37 = vpop.f32.mrf.mxu1  ;;  %905 = vmatmul.msk.f32.vlgmr.msra.gmra.mxu3 %vm534_vm0, %v524_v38 }
  0xea   : > { %v507_v39 = vadd.f32 %v506_v37, %v457_v36 }
  0xec   : > { %898 = vmatmul.msk.f32.gmra.mxu2 %vm534_vm0, %v507_v39 }
  0xf0   : > { %v459_v40 = vpop.f32.mrf.mxu0 }
  0xf1   : > { %v508_v41 = vpop.f32.mrf.mxu1 }
  0xf2   : > { %v509_v42 = vadd.f32 %v508_v41, %v459_v40 }
  0xf4   : > { %899 = vmatmul.msk.f32.gmra.mxu2 %vm534_vm0, %v509_v42 }
  0xf8   : > { %v462_v43 = vpop.f32.mrf.mxu0 }
  0xf9   : > { %v511_v44 = vpop.f32.mrf.mxu1 }
  0xfa   : > { %v512_v45 = vadd.f32 %v511_v44, %v462_v43 }
  0xfc   : > { %900 = vmatmul.msk.f32.gmra.mxu2 %vm534_vm0, %v512_v45 }
 0x100   : > { %v464_v46 = vpop.f32.mrf.mxu0 }
 0x101   : > { %v513_v47 = vpop.f32.mrf.mxu1 }
 0x102   : > { %v514_v48 = vadd.f32 %v513_v47, %v464_v46 }
 0x104   : > { %901 = vmatmul.msk.f32.gmra.mxu2 %vm534_vm0, %v514_v48 }
 0x10c   : > { %902 = vmatmul.msk.f32.gmra.mxu2 %vm534_vm0, %v517_v49 }
 0x114   : > { %903 = vmatmul.msk.f32.gmra.mxu2 %vm534_vm0, %v519_v50 }
 0x11c   : > { %904 = vmatmul.msk.f32.gmra.mxu2 %vm534_vm0, %v522_v51 }
 0x12f   : > { %v600_v52 = vpop.f32.mrf.mxu2 }
 0x130   : > { %v601_v54 = vadd.f32 %v1016_v53, %v600_v52 }
 0x132   : > { %v648_v57 = vmax.f32 %v601_v54, 0.0 }
 0x137   : > { %v603_v55 = vpop.f32.mrf.mxu2 }
 0x138   : > { %v604_v56 = vadd.f32 %v1016_v53, %v603_v55 }
 0x13a   : > { %v649_v58 = vmax.f32 %v604_v56, 0.0 }
 0x13c   : > { %v944_v59 = vpack.c.bf16 %v649_v58, %v648_v57 }
 0x13e   : > { %945 = vst [vmem:[%s1181_s18] sm:$0xff] %v944_v59  }
 0x13f   : > { %v606_v60 = vpop.f32.mrf.mxu2 }
 0x140   : > { %v607_v61 = vadd.f32 %v1016_v53, %v606_v60 }
 0x142   : > { %v650_v0 = vmax.f32 %v607_v61, 0.0 }
 0x147   : > { %v609_v62 = vpop.f32.mrf.mxu2 }
 0x148   : > { %v610_v63 = vadd.f32 %v1016_v53, %v609_v62 }
 0x14a   : > { %v651_v1 = vmax.f32 %v610_v63, 0.0 }
 0x14c   : > { %v949_v2 = vpack.c.bf16 %v651_v1, %v650_v0 }
 0x14e   : > { %981 = vst [vmem:[%s1181_s18 + $0x8] sm:$0xff] %v949_v2  }
 0x14f   : > { %v612_v3 = vpop.f32.mrf.mxu2 }
 0x150   : > { %v613_v4 = vadd.f32 %v1016_v53, %v612_v3 }
 0x152   : > { %v652_v7 = vmax.f32 %v613_v4, 0.0 }
 0x157   : > { %v615_v5 = vpop.f32.mrf.mxu2 }
 0x158   : > { %v616_v6 = vadd.f32 %v1016_v53, %v615_v5 }
 0x15a   : > { %v653_v8 = vmax.f32 %v616_v6, 0.0 }
 0x15c   : > { %v954_v9 = vpack.c.bf16 %v653_v8, %v652_v7 }
 0x15e   : > { %982 = vst [vmem:[%s1181_s18 + $0x10] sm:$0xff] %v954_v9  }
 0x15f   : > { %v618_v10 = vpop.f32.mrf.mxu2 }
 0x160   : > { %v619_v11 = vadd.f32 %v1016_v53, %v618_v10 }
 0x162   : > { %v654_v14 = vmax.f32 %v619_v11, 0.0 }
 0x167   : > { %v621_v12 = vpop.f32.mrf.mxu2 }
 0x168   : > { %v622_v13 = vadd.f32 %v1016_v53, %v621_v12 }
 0x16a   : > { %v655_v15 = vmax.f32 %v622_v13, 0.0 }
 0x16c   : > { %v959_v16 = vpack.c.bf16 %v655_v15, %v654_v14  ;;  %v645_v37 = vpop.f32.mrf.mxu3 }
 0x16d   : > { %v646_v39 = vadd.f32 %v1016_v53, %v645_v37 }
 0x16e   : > { %983 = vst [vmem:[%s1181_s18 + $0x18] sm:$0xff] %v959_v16  }
 0x16f   : > { %v624_v17 = vpop.f32.mrf.mxu2  ;;  %v663_v42 = vmax.f32 %v646_v39, 0.0 }
 0x170   : > { %v625_v18 = vadd.f32 %v1016_v53, %v624_v17 }
 0x172   : > { %v656_v21 = vmax.f32 %v625_v18, 0.0 }
 0x177   : > { %v627_v19 = vpop.f32.mrf.mxu2 }
 0x178   : > { %v628_v20 = vadd.f32 %v1016_v53, %v627_v19 }
 0x17a   : > { %v657_v22 = vmax.f32 %v628_v20, 0.0 }
 0x17c   : > { %v964_v23 = vpack.c.bf16 %v657_v22, %v656_v21 }
 0x17e   : > { %984 = vst [vmem:[%s1181_s18 + $0x20] sm:$0xff] %v964_v23  }
 0x17f   : > { %v630_v24 = vpop.f32.mrf.mxu2 }
 0x180   : > { %v631_v25 = vadd.f32 %v1016_v53, %v630_v24 }
 0x182   : > { %v658_v28 = vmax.f32 %v631_v25, 0.0 }
 0x187   : > { %v633_v26 = vpop.f32.mrf.mxu2 }
 0x188   : > { %v634_v27 = vadd.f32 %v1016_v53, %v633_v26 }
 0x18a   : > { %v659_v29 = vmax.f32 %v634_v27, 0.0 }
 0x18c   : > { %v969_v30 = vpack.c.bf16 %v659_v29, %v658_v28 }
 0x18e   : > { %985 = vst [vmem:[%s1181_s18 + $0x28] sm:$0xff] %v969_v30  }
 0x18f   : > { %v636_v31 = vpop.f32.mrf.mxu2 }
 0x190   : > { %v637_v32 = vadd.f32 %v1016_v53, %v636_v31 }
 0x192   : > { %v660_v35 = vmax.f32 %v637_v32, 0.0 }
 0x197   : > { %v639_v33 = vpop.f32.mrf.mxu2 }
 0x198   : > { %v640_v34 = vadd.f32 %v1016_v53, %v639_v33 }
 0x19a   : > { %v661_v36 = vmax.f32 %v640_v34, 0.0 }
 0x19c   : > { %v974_v38 = vpack.c.bf16 %v661_v36, %v660_v35 }
 0x19e   : > { %986 = vst [vmem:[%s1181_s18 + $0x30] sm:$0xff] %v974_v38  }
 0x19f   : > { %v642_v40 = vpop.f32.mrf.mxu2 }
 0x1a0   : > { %v643_v41 = vadd.f32 %v1016_v53, %v642_v40 }
 0x1a2   : > { %v662_v43 = vmax.f32 %v643_v41, 0.0 }
 0x1a4   : > { %v979_v44 = vpack.c.bf16 %v663_v42, %v662_v43 }
 0x1a6   : > { %987 = vst [vmem:[%s1181_s18 + $0x38] sm:$0xff] %v979_v44  }
 0x1a7 PF: > { %s14_s15 = sadd.s32 1, %s1023_s15  }
 0x1a8   : > { %p11_p4 = scmp.ge.s32.totalorder %s14_s15, 4  }
 0x1aa   :  { %13 = sbr.rel (!%p11_p4) target bundleno = 1 (0x1), region = 66 }

</bundles_post_ra>
